<compile_context>
chip_gen: v7x
topology: tpu7x:2x2x1
jax: 0.10.0
libtpu: 0.0.40
codegen_flags: <defaults>
</compile_context>

<pallas_src>
import jax
import jax.numpy as jnp
from jax import lax
from jax.experimental import pallas as pl
from jax.experimental.pallas import tpu as pltpu

NEG_SLOPE = 0.01           # PyTorch LeakyReLU default
R = 18                     # Ho * Wo = 3 * 6 spatial positions

# Row offsets inside the packed "small" parameter slab (weight starts sublane-aligned).
_W1_ROW, _W2_ROW, _W3_ROW, _WF2_ROW = 0, 8, 16, 24
_B1_ROW, _B2_ROW, _B3_ROW, _BF1_ROW, _BF2_ROW = 96, 97, 98, 99, 100
_SLAB_ROWS = 104           # padded to a multiple of 8 sublanes


def _lrelu(x):
    return jnp.where(x > 0, x, NEG_SLOPE * x)


# ----------------------------------------------------------------------------- kernel
def cnn_kernel(patches_ref,    # (18, 4)    im2col patches of the input
               small_ref,      # (104, 128) packed conv/fc2 weights + all biases
               wf1_ref,        # (288, 72)  fc1 weight, row index = r*16 + c
               out_ref):       # (1, 3)
    # conv1 (2x2 kernel) as patches @ W1 -> (18, 4), then LeakyReLU
    w1 = small_ref[_W1_ROW:_W1_ROW + 4, 0:4]
    b1 = small_ref[_B1_ROW:_B1_ROW + 1, 0:4]
    h1 = _lrelu(jnp.dot(patches_ref[...], w1, preferred_element_type=jnp.float32) + b1)

    # conv2 (1x1) as channel matmul -> (18, 8)
    w2 = small_ref[_W2_ROW:_W2_ROW + 4, 0:8]
    b2 = small_ref[_B2_ROW:_B2_ROW + 1, 0:8]
    h2 = _lrelu(jnp.dot(h1, w2, preferred_element_type=jnp.float32) + b2)

    # conv3 (1x1) as channel matmul -> (18, 16)
    w3 = small_ref[_W3_ROW:_W3_ROW + 8, 0:16]
    b3 = small_ref[_B3_ROW:_B3_ROW + 1, 0:16]
    h3 = _lrelu(jnp.dot(h2, w3, preferred_element_type=jnp.float32) + b3)

    # fc1: contraction over (spatial r, channel c) without an in-kernel reshape.
    # 18 independent (1,16)@(16,72) dots against sublane-aligned slices of the flat
    # (288,72) weight slab; they pipeline on the MXU (no serial accumulator), and are
    # combined with a log-depth tree of VALU adds.
    parts = [
        jnp.dot(h3[r:r + 1, :], wf1_ref[r * 16:(r + 1) * 16, :],
                preferred_element_type=jnp.float32)
        for r in range(R)
    ]
    while len(parts) > 1:
        nxt = [parts[i] + parts[i + 1] for i in range(0, len(parts) - 1, 2)]
        if len(parts) % 2:
            nxt.append(parts[-1])
        parts = nxt
    bf1 = small_ref[_BF1_ROW:_BF1_ROW + 1, 0:72]
    h4 = _lrelu(parts[0] + bf1)                                   # (1, 72)

    # fc2 + log_softmax(dim=1)
    wf2 = small_ref[_WF2_ROW:_WF2_ROW + 72, 0:3]                  # (72, 3)
    bf2 = small_ref[_BF2_ROW:_BF2_ROW + 1, 0:3]
    logits = jnp.dot(h4, wf2, preferred_element_type=jnp.float32) + bf2   # (1, 3)
    m = jnp.max(logits, axis=1, keepdims=True)
    lse = m + jnp.log(jnp.sum(jnp.exp(logits - m), axis=1, keepdims=True))
    out_ref[...] = (logits - lse).astype(jnp.float32)


# ----------------------------------------------------------------------------- one-time param packing (off the hot path)
def pack_params(params):
    """Pack all weights/biases into two kernel-ready f32 slabs (done ONCE)."""
    (w1, b1, w2, b2, w3, b3, wf1, bf1, wf2, bf2) = params
    small = jnp.zeros((_SLAB_ROWS, 128), jnp.float32)
    small = small.at[_W1_ROW:_W1_ROW + 4, 0:4].set(w1.reshape(4, 4).T)    # (kflat, cout)
    small = small.at[_W2_ROW:_W2_ROW + 4, 0:8].set(w2.reshape(8, 4).T)    # (cin, cout)
    small = small.at[_W3_ROW:_W3_ROW + 8, 0:16].set(w3.reshape(16, 8).T)  # (cin, cout)
    small = small.at[_WF2_ROW:_WF2_ROW + 72, 0:3].set(wf2.T)              # (72, 3)
    small = small.at[_B1_ROW, 0:4].set(b1)
    small = small.at[_B2_ROW, 0:8].set(b2)
    small = small.at[_B3_ROW, 0:16].set(b3)
    small = small.at[_BF1_ROW, 0:72].set(bf1)
    small = small.at[_BF2_ROW, 0:3].set(bf2)
    # PyTorch flatten index of conv3 output: idx = c*R + r (NCHW, r = h*Wo + w).
    # fc1 weight (72, 288) -> flat (288, 72) with row index r*16 + c:
    #   wf1_flat[r*16 + c, j] == wf1[j, c*R + r]
    wf1_flat = jnp.transpose(wf1.reshape(72, 16, R), (2, 1, 0)).reshape(R * 16, 72)
    return small, wf1_flat


# ----------------------------------------------------------------------------- wrapper
def _im2col_2x2(x):
    # x: (1, 1, H, W) -> (Ho*Wo, 4) patch matrix, column order = (dy, dx)
    # TODO(synk): this (3,6)->(18,) spatial flatten has no clean in-kernel equivalent
    # without a lane/sublane relayout reshape, so it stays in the jit-fused wrapper.
    H, W = x.shape[2], x.shape[3]
    Ho, Wo = H - 1, W - 1
    cols = []
    for dy in range(2):
        for dx in range(2):
            cols.append(x[0, 0, dy:dy + Ho, dx:dx + Wo].reshape(Ho * Wo, 1))
    return jnp.concatenate(cols, axis=1)


@jax.jit
def cnn_forward_pallas(x, small_slab, wf1_flat):
    patches = _im2col_2x2(x)                       # (18, 4), fused into this executable
    vmem = pl.BlockSpec(memory_space=pltpu.MemorySpace.VMEM)
    return pl.pallas_call(
        cnn_kernel,
        out_shape=jax.ShapeDtypeStruct((1, 3), jnp.float32),
        in_specs=[vmem, vmem, vmem],               # 3 input DMAs total
        out_specs=vmem,
    )(patches, small_slab, wf1_flat)


# ----------------------------------------------------------------------------- reference
def cnn_forward_ref(x, params):
    (w1, b1, w2, b2, w3, b3, wf1, bf1, wf2, bf2) = params
    dn = ("NCHW", "OIHW", "NCHW")
    y = lax.conv_general_dilated(x, w1, (1, 1), "VALID", dimension_numbers=dn,
                                 precision=lax.Precision.HIGHEST) + b1.reshape(1, -1, 1, 1)
    y = _lrelu(y)
    y = lax.conv_general_dilated(y, w2, (1, 1), "VALID", dimension_numbers=dn,
                                 precision=lax.Precision.HIGHEST) + b2.reshape(1, -1, 1, 1)
    y = _lrelu(y)
    y = lax.conv_general_dilated(y, w3, (1, 1), "VALID", dimension_numbers=dn,
                                 precision=lax.Precision.HIGHEST) + b3.reshape(1, -1, 1, 1)
    y = _lrelu(y)
    flat = y.reshape(1, -1)                                   # NCHW flatten, (1, 288)
    h = _lrelu(flat @ wf1.T + bf1)
    logits = h @ wf2.T + bf2
    return jax.nn.log_softmax(logits, axis=1).astype(jnp.float32)


# ----------------------------------------------------------------------------- main
def _init_params(key):
    ks = jax.random.split(key, 10)

    def u(k, shape, fan_in):
        bound = 1.0 / float(fan_in) ** 0.5
        return jax.random.uniform(k, shape, jnp.float32, -bound, bound)

    w1 = u(ks[0], (4, 1, 2, 2), 4);    b1 = u(ks[1], (4,), 4)
    w2 = u(ks[2], (8, 4, 1, 1), 4);    b2 = u(ks[3], (8,), 4)
    w3 = u(ks[4], (16, 8, 1, 1), 8);   b3 = u(ks[5], (16,), 8)
    wf1 = u(ks[6], (72, 288), 288);    bf1 = u(ks[7], (72,), 288)
    wf2 = u(ks[8], (3, 72), 72);       bf2 = u(ks[9], (3,), 72)
    return (w1, b1, w2, b2, w3, b3, wf1, bf1, wf2, bf2)


if __name__ == "__main__":
    key = jax.random.PRNGKey(0)
    k_x, k_p = jax.random.split(key)
    # (H-1)*(W-1)*16 must equal 288 and batch must be 1 (module hardcodes view(1, -1)).
    x = jax.random.normal(k_x, (1, 1, 4, 7), jnp.float32)
    params = _init_params(k_p)

    # One-time parameter packing into kernel-ready layout (not on the per-call path).
    small_slab, wf1_flat = pack_params(params)
    small_slab = jax.block_until_ready(small_slab)
    wf1_flat = jax.block_until_ready(wf1_flat)

    out = jax.block_until_ready(cnn_forward_pallas(x, small_slab, wf1_flat))
    ref = jax.block_until_ready(cnn_forward_ref(x, params))

    assert out.shape == (1, 3) and out.dtype == jnp.float32
    assert jnp.allclose(out, ref, atol=1e-3, rtol=1e-3), (out, ref)
    print("KERNEL_OK")
</pallas_src>

<mosaic_0001>
module attributes {stable_mosaic.version = 11 : i64} {
  func.func @cnn_kernel(%arg0: memref<18x4xf32, #tpu.memory_space<vmem>>, %arg1: memref<104x128xf32, #tpu.memory_space<vmem>>, %arg2: memref<288x72xf32, #tpu.memory_space<vmem>>, %arg3: memref<1x3xf32, #tpu.memory_space<vmem>>) attributes {dimension_semantics = [], scalar_prefetch = 0 : i64, scratch_operands = 0 : i64, tpu.core_type = #tpu.core_type<tc>} {
    %c0 = arith.constant 0 : index
    %c0_0 = arith.constant 0 : index
    %0 = vector.load %arg1[%c0, %c0_0] : memref<104x128xf32, #tpu.memory_space<vmem>>, vector<4x4xf32>
    %c96 = arith.constant 96 : index
    %c0_1 = arith.constant 0 : index
    %1 = vector.load %arg1[%c96, %c0_1] : memref<104x128xf32, #tpu.memory_space<vmem>>, vector<1x4xf32>
    %c0_2 = arith.constant 0 : index
    %c0_3 = arith.constant 0 : index
    %2 = vector.load %arg0[%c0_2, %c0_3] : memref<18x4xf32, #tpu.memory_space<vmem>>, vector<18x4xf32>
    %cst = arith.constant dense<0.000000e+00> : vector<18x4xf32>
    %3 = tpu.matmul %2, %0, %cst {dimension_numbers = #tpu.dot_dimension_numbers<[1], [0], [0], [1], [0, 0, 1, 1], [], []>} : vector<18x4xf32>, vector<4x4xf32>, vector<18x4xf32> -> vector<18x4xf32>
    %4 = vector.broadcast %1 : vector<1x4xf32> to vector<18x4xf32>
    %5 = arith.addf %3, %4 : vector<18x4xf32>
    %cst_4 = arith.constant 0.000000e+00 : f32
    %6 = vector.broadcast %cst_4 : f32 to vector<18x4xf32>
    %7 = arith.cmpf ogt, %5, %6 : vector<18x4xf32>
    %cst_5 = arith.constant 0.00999999977 : f32
    %8 = vector.broadcast %cst_5 : f32 to vector<18x4xf32>
    %9 = arith.mulf %8, %5 : vector<18x4xf32>
    %10 = arith.select %7, %5, %9 : vector<18x4xi1>, vector<18x4xf32>
    %c8 = arith.constant 8 : index
    %c0_6 = arith.constant 0 : index
    %11 = vector.load %arg1[%c8, %c0_6] : memref<104x128xf32, #tpu.memory_space<vmem>>, vector<4x8xf32>
    %c97 = arith.constant 97 : index
    %c0_7 = arith.constant 0 : index
    %12 = vector.load %arg1[%c97, %c0_7] : memref<104x128xf32, #tpu.memory_space<vmem>>, vector<1x8xf32>
    %cst_8 = arith.constant dense<0.000000e+00> : vector<18x8xf32>
    %13 = tpu.matmul %10, %11, %cst_8 {dimension_numbers = #tpu.dot_dimension_numbers<[1], [0], [0], [1], [0, 0, 1, 1], [], []>} : vector<18x4xf32>, vector<4x8xf32>, vector<18x8xf32> -> vector<18x8xf32>
    %14 = vector.broadcast %12 : vector<1x8xf32> to vector<18x8xf32>
    %15 = arith.addf %13, %14 : vector<18x8xf32>
    %cst_9 = arith.constant 0.000000e+00 : f32
    %16 = vector.broadcast %cst_9 : f32 to vector<18x8xf32>
    %17 = arith.cmpf ogt, %15, %16 : vector<18x8xf32>
    %cst_10 = arith.constant 0.00999999977 : f32
    %18 = vector.broadcast %cst_10 : f32 to vector<18x8xf32>
    %19 = arith.mulf %18, %15 : vector<18x8xf32>
    %20 = arith.select %17, %15, %19 : vector<18x8xi1>, vector<18x8xf32>
    %c16 = arith.constant 16 : index
    %c0_11 = arith.constant 0 : index
    %21 = vector.load %arg1[%c16, %c0_11] : memref<104x128xf32, #tpu.memory_space<vmem>>, vector<8x16xf32>
    %c98 = arith.constant 98 : index
    %c0_12 = arith.constant 0 : index
    %22 = vector.load %arg1[%c98, %c0_12] : memref<104x128xf32, #tpu.memory_space<vmem>>, vector<1x16xf32>
    %cst_13 = arith.constant dense<0.000000e+00> : vector<18x16xf32>
    %23 = tpu.matmul %20, %21, %cst_13 {dimension_numbers = #tpu.dot_dimension_numbers<[1], [0], [0], [1], [0, 0, 1, 1], [], []>} : vector<18x8xf32>, vector<8x16xf32>, vector<18x16xf32> -> vector<18x16xf32>
    %24 = vector.broadcast %22 : vector<1x16xf32> to vector<18x16xf32>
    %25 = arith.addf %23, %24 : vector<18x16xf32>
    %cst_14 = arith.constant 0.000000e+00 : f32
    %26 = vector.broadcast %cst_14 : f32 to vector<18x16xf32>
    %27 = arith.cmpf ogt, %25, %26 : vector<18x16xf32>
    %cst_15 = arith.constant 0.00999999977 : f32
    %28 = vector.broadcast %cst_15 : f32 to vector<18x16xf32>
    %29 = arith.mulf %28, %25 : vector<18x16xf32>
    %30 = arith.select %27, %25, %29 : vector<18x16xi1>, vector<18x16xf32>
    %31 = vector.extract_strided_slice %30 {offsets = [0, 0], sizes = [1, 16], strides = [1, 1]} : vector<18x16xf32> to vector<1x16xf32>
    %c0_16 = arith.constant 0 : index
    %c0_17 = arith.constant 0 : index
    %32 = vector.load %arg2[%c0_16, %c0_17] : memref<288x72xf32, #tpu.memory_space<vmem>>, vector<16x72xf32>
    %cst_18 = arith.constant dense<0.000000e+00> : vector<1x72xf32>
    %33 = tpu.matmul %31, %32, %cst_18 {dimension_numbers = #tpu.dot_dimension_numbers<[1], [0], [0], [1], [0, 0, 1, 1], [], []>} : vector<1x16xf32>, vector<16x72xf32>, vector<1x72xf32> -> vector<1x72xf32>
    %34 = vector.extract_strided_slice %30 {offsets = [1, 0], sizes = [1, 16], strides = [1, 1]} : vector<18x16xf32> to vector<1x16xf32>
    %c16_19 = arith.constant 16 : index
    %c0_20 = arith.constant 0 : index
    %35 = vector.load %arg2[%c16_19, %c0_20] : memref<288x72xf32, #tpu.memory_space<vmem>>, vector<16x72xf32>
    %cst_21 = arith.constant dense<0.000000e+00> : vector<1x72xf32>
    %36 = tpu.matmul %34, %35, %cst_21 {dimension_numbers = #tpu.dot_dimension_numbers<[1], [0], [0], [1], [0, 0, 1, 1], [], []>} : vector<1x16xf32>, vector<16x72xf32>, vector<1x72xf32> -> vector<1x72xf32>
    %37 = vector.extract_strided_slice %30 {offsets = [2, 0], sizes = [1, 16], strides = [1, 1]} : vector<18x16xf32> to vector<1x16xf32>
    %c32 = arith.constant 32 : index
    %c0_22 = arith.constant 0 : index
    %38 = vector.load %arg2[%c32, %c0_22] : memref<288x72xf32, #tpu.memory_space<vmem>>, vector<16x72xf32>
    %cst_23 = arith.constant dense<0.000000e+00> : vector<1x72xf32>
    %39 = tpu.matmul %37, %38, %cst_23 {dimension_numbers = #tpu.dot_dimension_numbers<[1], [0], [0], [1], [0, 0, 1, 1], [], []>} : vector<1x16xf32>, vector<16x72xf32>, vector<1x72xf32> -> vector<1x72xf32>
    %40 = vector.extract_strided_slice %30 {offsets = [3, 0], sizes = [1, 16], strides = [1, 1]} : vector<18x16xf32> to vector<1x16xf32>
    %c48 = arith.constant 48 : index
    %c0_24 = arith.constant 0 : index
    %41 = vector.load %arg2[%c48, %c0_24] : memref<288x72xf32, #tpu.memory_space<vmem>>, vector<16x72xf32>
    %cst_25 = arith.constant dense<0.000000e+00> : vector<1x72xf32>
    %42 = tpu.matmul %40, %41, %cst_25 {dimension_numbers = #tpu.dot_dimension_numbers<[1], [0], [0], [1], [0, 0, 1, 1], [], []>} : vector<1x16xf32>, vector<16x72xf32>, vector<1x72xf32> -> vector<1x72xf32>
    %43 = vector.extract_strided_slice %30 {offsets = [4, 0], sizes = [1, 16], strides = [1, 1]} : vector<18x16xf32> to vector<1x16xf32>
    %c64 = arith.constant 64 : index
    %c0_26 = arith.constant 0 : index
    %44 = vector.load %arg2[%c64, %c0_26] : memref<288x72xf32, #tpu.memory_space<vmem>>, vector<16x72xf32>
    %cst_27 = arith.constant dense<0.000000e+00> : vector<1x72xf32>
    %45 = tpu.matmul %43, %44, %cst_27 {dimension_numbers = #tpu.dot_dimension_numbers<[1], [0], [0], [1], [0, 0, 1, 1], [], []>} : vector<1x16xf32>, vector<16x72xf32>, vector<1x72xf32> -> vector<1x72xf32>
    %46 = vector.extract_strided_slice %30 {offsets = [5, 0], sizes = [1, 16], strides = [1, 1]} : vector<18x16xf32> to vector<1x16xf32>
    %c80 = arith.constant 80 : index
    %c0_28 = arith.constant 0 : index
    %47 = vector.load %arg2[%c80, %c0_28] : memref<288x72xf32, #tpu.memory_space<vmem>>, vector<16x72xf32>
    %cst_29 = arith.constant dense<0.000000e+00> : vector<1x72xf32>
    %48 = tpu.matmul %46, %47, %cst_29 {dimension_numbers = #tpu.dot_dimension_numbers<[1], [0], [0], [1], [0, 0, 1, 1], [], []>} : vector<1x16xf32>, vector<16x72xf32>, vector<1x72xf32> -> vector<1x72xf32>
    %49 = vector.extract_strided_slice %30 {offsets = [6, 0], sizes = [1, 16], strides = [1, 1]} : vector<18x16xf32> to vector<1x16xf32>
    %c96_30 = arith.constant 96 : index
    %c0_31 = arith.constant 0 : index
    %50 = vector.load %arg2[%c96_30, %c0_31] : memref<288x72xf32, #tpu.memory_space<vmem>>, vector<16x72xf32>
    %cst_32 = arith.constant dense<0.000000e+00> : vector<1x72xf32>
    %51 = tpu.matmul %49, %50, %cst_32 {dimension_numbers = #tpu.dot_dimension_numbers<[1], [0], [0], [1], [0, 0, 1, 1], [], []>} : vector<1x16xf32>, vector<16x72xf32>, vector<1x72xf32> -> vector<1x72xf32>
    %52 = vector.extract_strided_slice %30 {offsets = [7, 0], sizes = [1, 16], strides = [1, 1]} : vector<18x16xf32> to vector<1x16xf32>
    %c112 = arith.constant 112 : index
    %c0_33 = arith.constant 0 : index
    %53 = vector.load %arg2[%c112, %c0_33] : memref<288x72xf32, #tpu.memory_space<vmem>>, vector<16x72xf32>
    %cst_34 = arith.constant dense<0.000000e+00> : vector<1x72xf32>
    %54 = tpu.matmul %52, %53, %cst_34 {dimension_numbers = #tpu.dot_dimension_numbers<[1], [0], [0], [1], [0, 0, 1, 1], [], []>} : vector<1x16xf32>, vector<16x72xf32>, vector<1x72xf32> -> vector<1x72xf32>
    %55 = vector.extract_strided_slice %30 {offsets = [8, 0], sizes = [1, 16], strides = [1, 1]} : vector<18x16xf32> to vector<1x16xf32>
    %c128 = arith.constant 128 : index
    %c0_35 = arith.constant 0 : index
    %56 = vector.load %arg2[%c128, %c0_35] : memref<288x72xf32, #tpu.memory_space<vmem>>, vector<16x72xf32>
    %cst_36 = arith.constant dense<0.000000e+00> : vector<1x72xf32>
    %57 = tpu.matmul %55, %56, %cst_36 {dimension_numbers = #tpu.dot_dimension_numbers<[1], [0], [0], [1], [0, 0, 1, 1], [], []>} : vector<1x16xf32>, vector<16x72xf32>, vector<1x72xf32> -> vector<1x72xf32>
    %58 = vector.extract_strided_slice %30 {offsets = [9, 0], sizes = [1, 16], strides = [1, 1]} : vector<18x16xf32> to vector<1x16xf32>
    %c144 = arith.constant 144 : index
    %c0_37 = arith.constant 0 : index
    %59 = vector.load %arg2[%c144, %c0_37] : memref<288x72xf32, #tpu.memory_space<vmem>>, vector<16x72xf32>
    %cst_38 = arith.constant dense<0.000000e+00> : vector<1x72xf32>
    %60 = tpu.matmul %58, %59, %cst_38 {dimension_numbers = #tpu.dot_dimension_numbers<[1], [0], [0], [1], [0, 0, 1, 1], [], []>} : vector<1x16xf32>, vector<16x72xf32>, vector<1x72xf32> -> vector<1x72xf32>
    %61 = vector.extract_strided_slice %30 {offsets = [10, 0], sizes = [1, 16], strides = [1, 1]} : vector<18x16xf32> to vector<1x16xf32>
    %c160 = arith.constant 160 : index
    %c0_39 = arith.constant 0 : index
    %62 = vector.load %arg2[%c160, %c0_39] : memref<288x72xf32, #tpu.memory_space<vmem>>, vector<16x72xf32>
    %cst_40 = arith.constant dense<0.000000e+00> : vector<1x72xf32>
    %63 = tpu.matmul %61, %62, %cst_40 {dimension_numbers = #tpu.dot_dimension_numbers<[1], [0], [0], [1], [0, 0, 1, 1], [], []>} : vector<1x16xf32>, vector<16x72xf32>, vector<1x72xf32> -> vector<1x72xf32>
    %64 = vector.extract_strided_slice %30 {offsets = [11, 0], sizes = [1, 16], strides = [1, 1]} : vector<18x16xf32> to vector<1x16xf32>
    %c176 = arith.constant 176 : index
    %c0_41 = arith.constant 0 : index
    %65 = vector.load %arg2[%c176, %c0_41] : memref<288x72xf32, #tpu.memory_space<vmem>>, vector<16x72xf32>
    %cst_42 = arith.constant dense<0.000000e+00> : vector<1x72xf32>
    %66 = tpu.matmul %64, %65, %cst_42 {dimension_numbers = #tpu.dot_dimension_numbers<[1], [0], [0], [1], [0, 0, 1, 1], [], []>} : vector<1x16xf32>, vector<16x72xf32>, vector<1x72xf32> -> vector<1x72xf32>
    %67 = vector.extract_strided_slice %30 {offsets = [12, 0], sizes = [1, 16], strides = [1, 1]} : vector<18x16xf32> to vector<1x16xf32>
    %c192 = arith.constant 192 : index
    %c0_43 = arith.constant 0 : index
    %68 = vector.load %arg2[%c192, %c0_43] : memref<288x72xf32, #tpu.memory_space<vmem>>, vector<16x72xf32>
    %cst_44 = arith.constant dense<0.000000e+00> : vector<1x72xf32>
    %69 = tpu.matmul %67, %68, %cst_44 {dimension_numbers = #tpu.dot_dimension_numbers<[1], [0], [0], [1], [0, 0, 1, 1], [], []>} : vector<1x16xf32>, vector<16x72xf32>, vector<1x72xf32> -> vector<1x72xf32>
    %70 = vector.extract_strided_slice %30 {offsets = [13, 0], sizes = [1, 16], strides = [1, 1]} : vector<18x16xf32> to vector<1x16xf32>
    %c208 = arith.constant 208 : index
    %c0_45 = arith.constant 0 : index
    %71 = vector.load %arg2[%c208, %c0_45] : memref<288x72xf32, #tpu.memory_space<vmem>>, vector<16x72xf32>
    %cst_46 = arith.constant dense<0.000000e+00> : vector<1x72xf32>
    %72 = tpu.matmul %70, %71, %cst_46 {dimension_numbers = #tpu.dot_dimension_numbers<[1], [0], [0], [1], [0, 0, 1, 1], [], []>} : vector<1x16xf32>, vector<16x72xf32>, vector<1x72xf32> -> vector<1x72xf32>
    %73 = vector.extract_strided_slice %30 {offsets = [14, 0], sizes = [1, 16], strides = [1, 1]} : vector<18x16xf32> to vector<1x16xf32>
    %c224 = arith.constant 224 : index
    %c0_47 = arith.constant 0 : index
    %74 = vector.load %arg2[%c224, %c0_47] : memref<288x72xf32, #tpu.memory_space<vmem>>, vector<16x72xf32>
    %cst_48 = arith.constant dense<0.000000e+00> : vector<1x72xf32>
    %75 = tpu.matmul %73, %74, %cst_48 {dimension_numbers = #tpu.dot_dimension_numbers<[1], [0], [0], [1], [0, 0, 1, 1], [], []>} : vector<1x16xf32>, vector<16x72xf32>, vector<1x72xf32> -> vector<1x72xf32>
    %76 = vector.extract_strided_slice %30 {offsets = [15, 0], sizes = [1, 16], strides = [1, 1]} : vector<18x16xf32> to vector<1x16xf32>
    %c240 = arith.constant 240 : index
    %c0_49 = arith.constant 0 : index
    %77 = vector.load %arg2[%c240, %c0_49] : memref<288x72xf32, #tpu.memory_space<vmem>>, vector<16x72xf32>
    %cst_50 = arith.constant dense<0.000000e+00> : vector<1x72xf32>
    %78 = tpu.matmul %76, %77, %cst_50 {dimension_numbers = #tpu.dot_dimension_numbers<[1], [0], [0], [1], [0, 0, 1, 1], [], []>} : vector<1x16xf32>, vector<16x72xf32>, vector<1x72xf32> -> vector<1x72xf32>
    %79 = vector.extract_strided_slice %30 {offsets = [16, 0], sizes = [1, 16], strides = [1, 1]} : vector<18x16xf32> to vector<1x16xf32>
    %c256 = arith.constant 256 : index
    %c0_51 = arith.constant 0 : index
    %80 = vector.load %arg2[%c256, %c0_51] : memref<288x72xf32, #tpu.memory_space<vmem>>, vector<16x72xf32>
    %cst_52 = arith.constant dense<0.000000e+00> : vector<1x72xf32>
    %81 = tpu.matmul %79, %80, %cst_52 {dimension_numbers = #tpu.dot_dimension_numbers<[1], [0], [0], [1], [0, 0, 1, 1], [], []>} : vector<1x16xf32>, vector<16x72xf32>, vector<1x72xf32> -> vector<1x72xf32>
    %82 = vector.extract_strided_slice %30 {offsets = [17, 0], sizes = [1, 16], strides = [1, 1]} : vector<18x16xf32> to vector<1x16xf32>
    %c272 = arith.constant 272 : index
    %c0_53 = arith.constant 0 : index
    %83 = vector.load %arg2[%c272, %c0_53] : memref<288x72xf32, #tpu.memory_space<vmem>>, vector<16x72xf32>
    %cst_54 = arith.constant dense<0.000000e+00> : vector<1x72xf32>
    %84 = tpu.matmul %82, %83, %cst_54 {dimension_numbers = #tpu.dot_dimension_numbers<[1], [0], [0], [1], [0, 0, 1, 1], [], []>} : vector<1x16xf32>, vector<16x72xf32>, vector<1x72xf32> -> vector<1x72xf32>
    %85 = arith.addf %33, %36 : vector<1x72xf32>
    %86 = arith.addf %39, %42 : vector<1x72xf32>
    %87 = arith.addf %45, %48 : vector<1x72xf32>
    %88 = arith.addf %51, %54 : vector<1x72xf32>
    %89 = arith.addf %57, %60 : vector<1x72xf32>
    %90 = arith.addf %63, %66 : vector<1x72xf32>
    %91 = arith.addf %69, %72 : vector<1x72xf32>
    %92 = arith.addf %75, %78 : vector<1x72xf32>
    %93 = arith.addf %81, %84 : vector<1x72xf32>
    %94 = arith.addf %85, %86 : vector<1x72xf32>
    %95 = arith.addf %87, %88 : vector<1x72xf32>
    %96 = arith.addf %89, %90 : vector<1x72xf32>
    %97 = arith.addf %91, %92 : vector<1x72xf32>
    %98 = arith.addf %94, %95 : vector<1x72xf32>
    %99 = arith.addf %96, %97 : vector<1x72xf32>
    %100 = arith.addf %98, %99 : vector<1x72xf32>
    %101 = arith.addf %100, %93 : vector<1x72xf32>
    %c99 = arith.constant 99 : index
    %c0_55 = arith.constant 0 : index
    %102 = vector.load %arg1[%c99, %c0_55] : memref<104x128xf32, #tpu.memory_space<vmem>>, vector<1x72xf32>
    %103 = arith.addf %101, %102 : vector<1x72xf32>
    %cst_56 = arith.constant 0.000000e+00 : f32
    %104 = vector.broadcast %cst_56 : f32 to vector<1x72xf32>
    %105 = arith.cmpf ogt, %103, %104 : vector<1x72xf32>
    %cst_57 = arith.constant 0.00999999977 : f32
    %106 = vector.broadcast %cst_57 : f32 to vector<1x72xf32>
    %107 = arith.mulf %106, %103 : vector<1x72xf32>
    %108 = arith.select %105, %103, %107 : vector<1x72xi1>, vector<1x72xf32>
    %c24 = arith.constant 24 : index
    %c0_58 = arith.constant 0 : index
    %109 = vector.load %arg1[%c24, %c0_58] : memref<104x128xf32, #tpu.memory_space<vmem>>, vector<72x3xf32>
    %c100 = arith.constant 100 : index
    %c0_59 = arith.constant 0 : index
    %110 = vector.load %arg1[%c100, %c0_59] : memref<104x128xf32, #tpu.memory_space<vmem>>, vector<1x3xf32>
    %cst_60 = arith.constant dense<0.000000e+00> : vector<1x3xf32>
    %111 = tpu.matmul %108, %109, %cst_60 {dimension_numbers = #tpu.dot_dimension_numbers<[1], [0], [0], [1], [0, 0, 1, 1], [], []>} : vector<1x72xf32>, vector<72x3xf32>, vector<1x3xf32> -> vector<1x3xf32>
    %112 = arith.addf %111, %110 : vector<1x3xf32>
    %cst_61 = arith.constant dense<0xFF800000> : vector<1xf32>
    %113 = vector.multi_reduction <maximumf>, %112, %cst_61 [1] : vector<1x3xf32> to vector<1xf32>
    %114 = vector.shape_cast %113 : vector<1xf32> to vector<1x1xf32>
    %115 = vector.broadcast %114 : vector<1x1xf32> to vector<1x3xf32>
    %116 = arith.subf %112, %115 : vector<1x3xf32>
    %117 = math.exp %116 : vector<1x3xf32>
    %cst_62 = arith.constant dense<0.000000e+00> : vector<1xf32>
    %118 = vector.multi_reduction <add>, %117, %cst_62 [1] : vector<1x3xf32> to vector<1xf32>
    %119 = vector.shape_cast %118 : vector<1xf32> to vector<1x1xf32>
    %120 = math.log %119 : vector<1x1xf32>
    %121 = arith.addf %114, %120 : vector<1x1xf32>
    %122 = vector.broadcast %121 : vector<1x1xf32> to vector<1x3xf32>
    %123 = arith.subf %112, %122 : vector<1x3xf32>
    %c0_63 = arith.constant 0 : index
    %c0_64 = arith.constant 0 : index
    %124 = vector.load %arg3[%c0_63, %c0_64] : memref<1x3xf32, #tpu.memory_space<vmem>>, vector<1x3xf32>
    tpu.vector_store %arg3[%c0_63, %c0_64], %123 {strides = array<i32>} : memref<1x3xf32, #tpu.memory_space<vmem>>, vector<1x3xf32>,
    return
  }
}

</mosaic_0001>

<bundles_post_ra>
// kernel: squeeze.4
= control target key start
LH: loop header
LB: loop body
LE: loop exit
PB: predicated region body
PF: predicated region fallthrough
CT: control target
= control target key end

     0   :  { %vm7_vm0 = vcmask 48128   ;;  %s30_s8 = smov 6   ;;  %vm13_vm1 = vcmask 146528   ;;  %vm19_vm2 = vcmask 97328   ;;  %s47_s0 = inlined_call_operand.vmem [shape: f32[1,1,3,6], index: 0, kind: input, shape index: {}]   ;;  %s48_s1 = inlined_call_operand.vmem [shape: f32[18,1], index: 1, kind: output, shape index: {}]  }
   0x1   :  { %v4_v0 = vld [vmem:[%s47_s0] sm:$0xf]  ;;  %s29_s0 = smov 12  }
   0x2   :  { %5 = vst [vmem:[#allocation1] sm:$0xf] %v4_v0 }
   0x9   :  { %v10_v1 = vld [vmem:[#allocation1 + $0x2] sm:$0x1]   ;;  %v6_v2 = vld [vmem:[#allocation1] sm:$0x1]   ;;  %v16_v3 = vld [vmem:[#allocation1 + $0x1] sm:$0x1]  }
   0xa   :  { %11 = vrot.lane.b32.xlu0 %v10_v1, %s29_s0  ;;  %8 = vst.msk [vmem:[#allocation0] sm:$0x1] %vm7_vm0, %v6_v2  }
   0xe   :  { %17 = vrot.lane.b32.xlu0 %v16_v3, %s30_s8 }
  0x7c   :  { %v12_v4 = vpop.permute.xlu0 %11  }
  0x7d   :  { %14 = vst.msk [vmem:[#allocation0] sm:$0x1] %vm13_vm1, %v12_v4  }
  0x80   :  { %v18_v5 = vpop.permute.xlu0 %17  }
  0x81   :  { %20 = vst.msk [vmem:[#allocation0] sm:$0x1] %vm19_vm2, %v18_v5  }
  0x88   :  { %v24_v6 = vld [vmem:[#allocation0] sm:$0x1] }
  0x89   :  { %26 = vst [vmem:[%s48_s1] sm:$0x1] %v24_v6 }

// kernel: cnn_forward_pallas.1
= control target key start
LH: loop header
LB: loop body
LE: loop exit
PB: predicated region body
PF: predicated region fallthrough
CT: control target
= control target key end

     0   :  { %vm34_vm0 = vcmask 1043456   ;;  %v2205_v2 = vmov 0.0   ;;  %vm2206_vm1 = vmmov 0   ;;  %vm24_vm2 = vcmask 31744   ;;  %s2545_s0 = inlined_call_operand.vmem [shape: f32[18,4], index: 0, kind: input, shape index: {}]   ;;  %s2546_s1 = inlined_call_operand.vmem [shape: f32[104,128], index: 1, kind: input, shape index: {}]   ;;  %s2547_s2 = inlined_call_operand.vmem [shape: f32[288,72], index: 2, kind: input, shape index: {}]   ;;  %s2548_s3 = inlined_call_operand.hbm [shape: f32[1,3], index: 3, kind: output, shape index: {}]  }
   0x1   :  { %v15_v0 = vld [vmem:[%s2546_s1] sm:$0xf]  ;;  %1925 = vmatprep.subr.mxu0 %v2205_v2  ;;  %1927 = vmatprep.mubr.msk.f32.mxu0 %vm2206_vm1, %v2205_v2  ;;  %v127_v3 = vld [vmem:[%s2546_s1 + $0x8] sm:$0xf] }
   0x2   :  { %v17_v1 = vld [vmem:[%s2545_s0] sm:$0xff]  ;;  %1926 = vmatpush3.msk.msra.mxu0 %vm34_vm0, %v15_v0  ;;  %2171 = vmatprep.subr.mxu1 %v2205_v2 }
   0x3   :  { %8 = vsyncpa [#allocation3], 0  ;;  %1928 = vmatmul.mubr.msk.f32.vlgmr.msra.gmra.mrb[0].mxu0 %vm24_vm2, %v17_v1  ;;  %1936 = vmatprep.subr.mxu0 %v2205_v2  ;;  %v18_v4 = vld [vmem:[%s2545_s0 + $0x8] sm:$0xff]  ;;  %v19_v5 = vld [vmem:[%s2545_s0 + $0x10] sm:$0x3]  ;;  %vm240_vm7 = vcmask 64512  }
   0x4   :  { %1930 = vmatprep.mubr.msk.f32.mxu0 %vm2206_vm1, %v2205_v2  ;;  %1937 = vmatpush3.msk.msra.mxu0 %vm34_vm0, %v127_v3  ;;  %v1816_v6 = vld [vmem:[%s2546_s1 + $0x60] ss:$0 sm:$0xff]  ;;  %v234_v12 = vld [vmem:[%s2546_s1 + $0x10] sm:$0xff]  ;;  %v1821_v23 = vld [vmem:[%s2546_s1 + $0x61] ss:$0 sm:$0xff]  ;;  %v2207_v44 = vmov 0.0|0.0  }
   0x5   :  { %2172 = vmatpush3.msk.msra.mxu1 %vm34_vm0, %v127_v3  ;;  %1944 = vmatprep.mubr.msk.f32.mxu1 %vm2206_vm1, %v2205_v2  ;;  %v341_v39 = vld [vmem:[%s2547_s2 + $0x10] sm:$0xff]  ;;  %v342_v40 = vld [vmem:[%s2547_s2 + $0x18] sm:$0xff]  ;;  %v1826_v46 = vld [vmem:[%s2546_s1 + $0x62] ss:$0 sm:$0xff]  ;;  %vm345_vm11 = vcmask 130048   ;;  %vm1713_vm15 = vcmask 588800  }
   0x6   :  { %1947 = vmatprep.subr.mxu0 %v2205_v2  ;;  %v574_v41 = vld [vmem:[%s2547_s2 + $0x70] sm:$0xff]  ;;  %v2106_v42 = vpack.c.bf16 %v342_v40, %v341_v39  ;;  %v575_v43 = vld [vmem:[%s2547_s2 + $0x78] sm:$0xff]  ;;  %2105 = vmatprep.subr.bf16.mxu1 %v2207_v44  ;;  %v804_v39 = vld [vmem:[%s2547_s2 + $0xc0] sm:$0xff]  ;;  %vm1787_vm0 = vcmask 16384  }
   0x7   :  { %1931 = vmatmul.mubr.msk.f32.gmra.mrb[2].mxu0 %vm24_vm2, %v18_v4  ;;  %v2115_v45 = vpack.c.bf16 %v575_v43, %v574_v41  ;;  %v420_v50 = vld [vmem:[%s2547_s2 + $0x30] sm:$0xff]  ;;  %v421_v51 = vld [vmem:[%s2547_s2 + $0x38] sm:$0xff]  ;;  %v805_v40 = vld [vmem:[%s2547_s2 + $0xc8] sm:$0xff] }
   0x8   :  { %1933 = vmatprep.mubr.msk.f32.mxu0 %vm2206_vm1, %v2205_v2  ;;  %v729_v52 = vld [vmem:[%s2547_s2 + $0xb0] sm:$0xff]  ;;  %v730_v53 = vld [vmem:[%s2547_s2 + $0xb8] sm:$0xff]  ;;  %v2109_v59 = vpack.c.bf16 %v421_v51, %v420_v50  ;;  %v2151_v43 = vpack.c.bf16 %v805_v40, %v804_v39 }
   0x9   :  { %v2121_v60 = vpack.c.bf16 %v730_v53, %v729_v52  ;;  %v497_v61 = vld [vmem:[%s2547_s2 + $0x50] sm:$0xff]  ;;  %v498_v0 = vld [vmem:[%s2547_s2 + $0x58] sm:$0xff] }
   0xa   :  { %v883_v1 = vld [vmem:[%s2547_s2 + $0xf0] sm:$0xff]  ;;  %v884_v3 = vld [vmem:[%s2547_s2 + $0xf8] sm:$0xff] }
   0xb   :  { %1934 = vmatmul.mubr.msk.f32.gmra.mrb[4].mxu0 %vm24_vm2, %v19_v5 }
   0xc   :  { %1938 = vmatprep.mubr.msk.f32.mxu0 %vm2206_vm1, %v2205_v2 }
  0xd6   :  { %v104_v7 = vpop.f32.mrb[0].mxu0 }
  0xd7   :  { %v105_v8 = vadd.f32 %v1816_v6, %v104_v7  ;;  %v1929_v9 = vpop.f32.mrb[1].mxu0  ;;  %v2112_v7 = vpack.c.bf16 %v498_v0, %v497_v61  ;;  %v1704_v0 = vld [vmem:[%s2546_s1 + $0x20] sm:$0xff] }
  0xd9   :  { %vm118_vm3 = vcmp.gt.f32.partialorder %v105_v8, 0.0  ;;  %v121_v10 = vmul.f32 0.01, %v105_v8 }
  0xda   :  { %v109_v11 = vpop.f32.mrb[2].mxu0 }
  0xdb   :  { %v124_v13 = vsel %vm118_vm3, %v105_v8, %v121_v10  ;;  %v110_v14 = vadd.f32 %v1816_v6, %v109_v11  ;;  %v1932_v15 = vpop.f32.mrb[3].mxu0  ;;  %v2127_v8 = vpack.c.bf16 %v884_v3, %v883_v1  ;;  %v651_v10 = vld [vmem:[%s2547_s2 + $0x90] sm:$0xff]  ;;  %v1705_v3 = vld [vmem:[%s2546_s1 + $0x28] sm:$0xff] }
  0xdc   :  { %1939 = vmatmul.mubr.msk.f32.vlgmr.msra.gmra.mrb[6].mxu0 %vm24_vm2, %v124_v13  ;;  %v652_v13 = vld [vmem:[%s2547_s2 + $0x98] sm:$0xff]  ;;  %v340_v15 = vld [vmem:[%s2547_s2 + $0x8] sm:$0xff] }
  0xdd   :  { %vm119_vm4 = vcmp.gt.f32.partialorder %v110_v14, 0.0  ;;  %v122_v16 = vmul.f32 0.01, %v110_v14  ;;  %1941 = vmatprep.mubr.msk.f32.mxu0 %vm2206_vm1, %v2205_v2  ;;  %1948 = vmatpush3.msra.mxu0 %v234_v12 }
  0xde   :  { %v114_v17 = vpop.f32.mrb[4].mxu0  ;;  %2114 = vmatprep.subr.bf16.mxu0 %v2207_v44 }
  0xdf   :  { %v125_v18 = vsel %vm119_vm4, %v110_v14, %v122_v16  ;;  %v115_v19 = vadd.f32 %v1816_v6, %v114_v17  ;;  %v1935_v20 = vpop.f32.mrb[5].mxu0  ;;  %v339_v14 = vld [vmem:[%s2547_s2] sm:$0xff]  ;;  %v2118_v16 = vpack.c.bf16 %v652_v13, %v651_v10  ;;  %v1710_v10 = vld [vmem:[%s2546_s1 + $0x50] sm:$0xff] }
  0xe0   :  { %1942 = vmatmul.mubr.msk.f32.gmra.mrb[8].mxu0 %vm24_vm2, %v125_v18  ;;  %v2133_v17 = vpack.c.bf16 %v340_v15, %v339_v14  ;;  %v806_v18 = vld [vmem:[%s2547_s2 + $0xd0] sm:$0xff] }
  0xe1   :  { %vm120_vm5 = vcmp.gt.f32.partialorder %v115_v19, 0.0  ;;  %v123_v21 = vmul.f32 0.01, %v115_v19  ;;  %1949 = vmatprep.mubr.msk.f32.mxu0 %vm2206_vm1, %v2205_v2 }
  0xe3   :  { %v126_v22 = vsel %vm120_vm5, %v115_v19, %v123_v21  ;;  %v807_v21 = vld [vmem:[%s2547_s2 + $0xd8] sm:$0xff] }
  0xe4   :  { %1945 = vmatmul.mubr.msk.f32.vlgmr.msra.gmra.mrb[0].mxu1 %vm24_vm2, %v126_v22  ;;  %v495_v22 = vld [vmem:[%s2547_s2 + $0x40] sm:$0xff] }
  0xe5   :  { %1962 = vmatprep.mubr.msk.f32.mxu1 %vm2206_vm1, %v2205_v2  ;;  %2107 = vmatpush3.bf16.msra.mxu1 %v2106_v42 }
  0xe6   :  { %2108 = vmatprep.subr.bf16.mxu1 %v2207_v44 }
 0x1af   :  { %v211_v24 = vpop.f32.mrb[6].mxu0 }
 0x1b0   :  { %v212_v25 = vadd.f32 %v1821_v23, %v211_v24  ;;  %v1940_v26 = vpop.f32.mrb[7].mxu0 }
 0x1b2   :  { %vm225_vm6 = vcmp.gt.f32.partialorder %v212_v25, 0.0  ;;  %v228_v27 = vmul.f32 0.01, %v212_v25 }
 0x1b3   :  { %v216_v28 = vpop.f32.mrb[8].mxu0 }
 0x1b4   :  { %v231_v29 = vsel %vm225_vm6, %v212_v25, %v228_v27  ;;  %v217_v30 = vadd.f32 %v1821_v23, %v216_v28  ;;  %v1943_v31 = vpop.f32.mrb[9].mxu0  ;;  %v2124_v25 = vpack.c.bf16 %v807_v21, %v806_v18  ;;  %v960_v27 = vld [vmem:[%s2547_s2 + $0x110] sm:$0xff] }
 0x1b5   :  { %1950 = vmatmul.mubr.msk.f32.vlgmr.msra.gmra.mrb[10].mxu0 %vm240_vm7, %v231_v29  ;;  %v961_v29 = vld [vmem:[%s2547_s2 + $0x118] sm:$0xff]  ;;  %v650_v31 = vld [vmem:[%s2547_s2 + $0x88] sm:$0xff] }
 0x1b6   :  { %vm226_vm8 = vcmp.gt.f32.partialorder %v217_v30, 0.0  ;;  %v229_v32 = vmul.f32 0.01, %v217_v30  ;;  %1952 = vmatprep.mubr.msk.f32.mxu0 %vm2206_vm1, %v2205_v2  ;;  %2116 = vmatpush3.bf16.msra.mxu0 %v2115_v45  ;;  %v572_v45 = vld [vmem:[%s2547_s2 + $0x60] sm:$0xff] }
 0x1b7   :  { %v221_v33 = vpop.f32.mrb[0].mxu1  ;;  %2120 = vmatprep.subr.bf16.mxu0 %v2207_v44 }
 0x1b8   :  { %v232_v34 = vsel %vm226_vm8, %v217_v30, %v229_v32  ;;  %v222_v35 = vadd.f32 %v1821_v23, %v221_v33  ;;  %v1946_v36 = vpop.f32.mrb[1].mxu1  ;;  %v496_v23 = vld [vmem:[%s2547_s2 + $0x48] sm:$0xff]  ;;  %v649_v30 = vld [vmem:[%s2547_s2 + $0x80] sm:$0xff]  ;;  %v2130_v33 = vpack.c.bf16 %v961_v29, %v960_v27 }
 0x1b9   :  { %1953 = vmatmul.mubr.msk.f32.gmra.mrb[12].mxu0 %vm240_vm7, %v232_v34  ;;  %v2139_v26 = vpack.c.bf16 %v496_v23, %v495_v22  ;;  %v2145_v34 = vpack.c.bf16 %v650_v31, %v649_v30 }
 0x1ba   :  { %vm227_vm9 = vcmp.gt.f32.partialorder %v222_v35, 0.0  ;;  %v230_v37 = vmul.f32 0.01, %v222_v35  ;;  %1955 = vmatprep.mubr.msk.f32.mxu0 %vm2206_vm1, %v2205_v2 }
 0x1bc   :  { %v233_v38 = vsel %vm227_vm9, %v222_v35, %v230_v37  ;;  %v418_v35 = vld [vmem:[%s2547_s2 + $0x20] sm:$0xff] }
 0x1bd   :  { %1956 = vmatmul.mubr.msk.f32.gmra.mrb[14].mxu0 %vm240_vm7, %v233_v38  ;;  %v419_v38 = vld [vmem:[%s2547_s2 + $0x28] sm:$0xff] }
 0x1be   :  { %1983 = vmatprep.mubr.msk.f32.mxu0 %vm2206_vm1, %v2205_v2  ;;  %v2136_v42 = vpack.c.bf16 %v419_v38, %v418_v35 }
 0x288   :  { %v316_v47 = vpop.f32.mrb[10].mxu0 }
 0x289   :  { %v317_v48 = vadd.f32 %v1826_v46, %v316_v47  ;;  %v1951_v49 = vpop.f32.mrb[11].mxu0  ;;  %v573_v47 = vld [vmem:[%s2547_s2 + $0x68] sm:$0xff] }
 0x28a   :  { %v959_v49 = vld [vmem:[%s2547_s2 + $0x108] sm:$0xff]  ;;  %v2142_v50 = vpack.c.bf16 %v573_v47, %v572_v45 }
 0x28b   :  { %vm330_vm10 = vcmp.gt.f32.partialorder %v317_v48, 0.0  ;;  %v333_v54 = vmul.f32 0.01, %v317_v48 }
 0x28c   :  { %v321_v55 = vpop.f32.mrb[12].mxu0 }
 0x28d   :  { %v2322_v56 = vsel %vm330_vm10, %v317_v48, %v333_v54  ;;  %v322_v57 = vadd.f32 %v1826_v46, %v321_v55  ;;  %v1954_v58 = vpop.f32.mrb[13].mxu0  ;;  %v958_v48 = vld [vmem:[%s2547_s2 + $0x100] sm:$0xff]  ;;  %v728_v55 = vld [vmem:[%s2547_s2 + $0xa8] sm:$0xff] }
 0x28e   :  { %v344_v62 = vrot.slane %v2322_v56, 1  ;;  %v576_v63 = vrot.slane %v2322_v56, 7  ;;  %v422_v11 = vrot.slane %v2322_v56, 3  ;;  %v499_v19 = vrot.slane %v2322_v56, 5  ;;  %v727_v54 = vld [vmem:[%s2547_s2 + $0xa0] sm:$0xff] }
 0x28f   :  { %vm331_vm12 = vcmp.gt.f32.partialorder %v322_v57, 0.0  ;;  %v334_v4 = vmul.f32 0.01, %v322_v57  ;;  %v1181_v37 = vrot.slane %v2322_v56, 4  ;;  %v2157_v51 = vpack.c.bf16 %v959_v49, %v958_v48 }
 0x290   :  { %1963 = vmatmul.mubr.msk.f32.vlgmr.msra.gmra.mrb[2].mxu1 %vm345_vm11, %v344_v62  ;;  %1984 = vmatmul.mubr.msk.f32.vlgmr.msra.gmra.mrb[16].mxu0 %vm345_vm11, %v576_v63  ;;  %v326_v5 = vpop.f32.mrb[14].mxu0  ;;  %v1108_v52 = vrot.slane %v2322_v56, 2  ;;  %v1254_v58 = vrot.slane %v2322_v56, 6  ;;  %v1703_v63 = vld [vmem:[%s2546_s1 + $0x18] sm:$0xff] }
 0x291   :  { %v2340_v6 = vsel %vm331_vm12, %v322_v57, %v334_v4  ;;  %2110 = vmatpush3.bf16.msra.mxu1 %v2109_v59  ;;  %2122 = vmatpush3.bf16.msra.mxu0 %v2121_v60  ;;  %v1957_v9 = vpop.f32.mrb[15].mxu0  ;;  %v327_v24 = vadd.f32 %v1826_v46, %v326_v5  ;;  %v2148_v57 = vpack.c.bf16 %v728_v55, %v727_v54  ;;  %v881_v59 = vld [vmem:[%s2547_s2 + $0xe0] sm:$0xff]  ;;  %v882_v60 = vld [vmem:[%s2547_s2 + $0xe8] sm:$0xff]  ;;  %v1706_v4 = vld [vmem:[%s2546_s1 + $0x30] sm:$0xff] }
 0x292   :  { %1969 = vmatprep.mubr.msk.f32.mxu1 %vm2206_vm1, %v2205_v2  ;;  %2111 = vmatprep.subr.bf16.mxu1 %v2207_v44  ;;  %v731_v12 = vrot.slane %v2340_v6, 3  ;;  %v885_v20 = vrot.slane %v2340_v6, 7  ;;  %v654_v28 = vrot.slane %v2340_v6, 1  ;;  %v808_v36 = vrot.slane %v2340_v6, 5  ;;  %v1709_v9 = vld [vmem:[%s2546_s1 + $0x48] sm:$0xff] }
 0x293   :  { %1997 = vmatprep.mubr.msk.f32.mxu0 %vm2206_vm1, %v2205_v2  ;;  %2126 = vmatprep.subr.bf16.mxu0 %v2207_v44  ;;  %v335_v32 = vmul.f32 0.01, %v327_v24  ;;  %vm332_vm13 = vcmp.gt.f32.partialorder %v327_v24, 0.0  ;;  %v1472_v53 = vrot.slane %v2340_v6, 4  ;;  %v1399_v61 = vrot.slane %v2340_v6, 2 }
 0x294   :  { %1970 = vmatmul.mubr.msk.f32.vlgmr.msra.gmra.mrb[4].mxu1 %vm345_vm11, %v422_v11  ;;  %1998 = vmatmul.mubr.msk.f32.vlgmr.msra.gmra.mrb[18].mxu0 %vm345_vm11, %v731_v12  ;;  %v1545_v62 = vrot.slane %v2340_v6, 6  ;;  %v2160_v1 = vpack.c.bf16 %v1704_v0, %v1703_v63  ;;  %v2163_v5 = vpack.c.bf16 %v1706_v4, %v1705_v3  ;;  %v2169_v11 = vpack.c.bf16 %v1710_v10, %v1709_v9  ;;  %v1711_v12 = vld [vmem:[%s2546_s1 + $0x58] sm:$0xff]  ;;  %v1698_v0 = vld [vmem:[%s2546_s1 + $0x63] sm:$0x1] }
 0x295   :  { %2113 = vmatpush3.bf16.msra.mxu1 %v2112_v7  ;;  %2128 = vmatpush3.bf16.msra.mxu0 %v2127_v8  ;;  %v338_v41 = vsel %vm332_vm13, %v327_v24, %v335_v32  ;;  %v1708_v7 = vld [vmem:[%s2546_s1 + $0x40] sm:$0xff] }
 0x296   :  { %1976 = vmatprep.mubr.msk.f32.mxu1 %vm2206_vm1, %v2205_v2  ;;  %2117 = vmatprep.subr.bf16.mxu1 %v2207_v44  ;;  %v963_v46 = vrot.slane %v338_v41, 1 }
 0x297   :  { %2011 = vmatprep.mubr.msk.f32.mxu0 %vm2206_vm1, %v2205_v2  ;;  %2132 = vmatprep.subr.bf16.mxu0 %v2207_v44 }
 0x298   :  { %1977 = vmatmul.mubr.msk.f32.vlgmr.msra.gmra.mrb[6].mxu1 %vm345_vm11, %v499_v19  ;;  %2012 = vmatmul.mubr.msk.f32.vlgmr.msra.gmra.mrb[20].mxu0 %vm345_vm11, %v885_v20 }
 0x299   :  { %2119 = vmatpush3.bf16.msra.mxu1 %v2118_v16  ;;  %2134 = vmatpush3.bf16.msra.mxu0 %v2133_v17 }
 0x29a   :  { %1990 = vmatprep.mubr.msk.f32.mxu1 %vm2206_vm1, %v2205_v2  ;;  %2123 = vmatprep.subr.bf16.mxu1 %v2207_v44 }
 0x29b   :  { %2025 = vmatprep.mubr.msk.f32.mxu0 %vm2206_vm1, %v2205_v2  ;;  %2138 = vmatprep.subr.bf16.mxu0 %v2207_v44 }
 0x29c   :  { %1991 = vmatmul.mubr.msk.f32.vlgmr.msra.gmra.mrb[8].mxu1 %vm345_vm11, %v654_v28  ;;  %2026 = vmatmul.mubr.msk.f32.vlgmr.msra.gmra.mrb[22].mxu0 %vm345_vm11, %v2322_v56  ;;  %v2154_v56 = vpack.c.bf16 %v882_v60, %v881_v59 }
 0x29d   :  { %2125 = vmatpush3.bf16.msra.mxu1 %v2124_v25  ;;  %2140 = vmatpush3.bf16.msra.mxu0 %v2139_v26 }
 0x29e   :  { %2004 = vmatprep.mubr.msk.f32.mxu1 %vm2206_vm1, %v2205_v2  ;;  %2129 = vmatprep.subr.bf16.mxu1 %v2207_v44 }
 0x29f   :  { %2039 = vmatprep.mubr.msk.f32.mxu0 %vm2206_vm1, %v2205_v2  ;;  %2144 = vmatprep.subr.bf16.mxu0 %v2207_v44 }
 0x2a0   :  { %2005 = vmatmul.mubr.msk.f32.vlgmr.msra.gmra.mrb[10].mxu1 %vm345_vm11, %v808_v36  ;;  %2040 = vmatmul.mubr.msk.f32.vlgmr.msra.gmra.mrb[24].mxu0 %vm345_vm11, %v1181_v37 }
 0x2a1   :  { %2131 = vmatpush3.bf16.msra.mxu1 %v2130_v33  ;;  %2146 = vmatpush3.bf16.msra.mxu0 %v2145_v34 }
 0x2a2   :  { %2018 = vmatprep.mubr.msk.f32.mxu1 %vm2206_vm1, %v2205_v2  ;;  %2135 = vmatprep.subr.bf16.mxu1 %v2207_v44 }
 0x2a3   :  { %2053 = vmatprep.mubr.msk.f32.mxu0 %vm2206_vm1, %v2205_v2  ;;  %2150 = vmatprep.subr.bf16.mxu0 %v2207_v44 }
 0x2a4   :  { %2019 = vmatmul.mubr.msk.f32.vlgmr.msra.gmra.mrb[12].mxu1 %vm345_vm11, %v963_v46  ;;  %2054 = vmatmul.mubr.msk.f32.vlgmr.msra.gmra.mrb[26].mxu0 %vm345_vm11, %v2340_v6  ;;  %v1707_v6 = vld [vmem:[%s2546_s1 + $0x38] sm:$0xff] }
 0x2a5   :  { %2137 = vmatpush3.bf16.msra.mxu1 %v2136_v42  ;;  %2152 = vmatpush3.bf16.msra.mxu0 %v2151_v43  ;;  %v2166_v8 = vpack.c.bf16 %v1708_v7, %v1707_v6  ;;  %v1712_v6 = vld [vmem:[%s2546_s1 + $0x64] sm:$0x1]  ;;  %s2208_s1 = smov [#allocation2]  }
 0x2a6   :  { %2032 = vmatprep.mubr.msk.f32.mxu1 %vm2206_vm1, %v2205_v2  ;;  %2141 = vmatprep.subr.bf16.mxu1 %v2207_v44  ;;  %s1808_s11 = sshll.u32 %s2208_s1, 4  ;;  %s1809_s11 = int_to_ptr.vmem [resolvable:$true] %s1808_s11 }
 0x2a7   :  { %2067 = vmatprep.mubr.msk.f32.mxu0 %vm2206_vm1, %v2205_v2  ;;  %2156 = vmatprep.subr.bf16.mxu0 %v2207_v44  ;;  %s2181_s12 = scalar_lea.vmem %s1809_s11, 16  ;;  %s2185_s13 = scalar_lea.vmem %s1809_s11, 32 }
 0x2a8   :  { %2033 = vmatmul.mubr.msk.f32.vlgmr.msra.gmra.mrb[14].mxu1 %vm345_vm11, %v1108_v52  ;;  %2068 = vmatmul.mubr.msk.f32.vlgmr.msra.gmra.mrb[28].mxu0 %vm345_vm11, %v1472_v53  ;;  %p2182_p0 = scmp.ne.s32.totalorder %s1809_s11, %s2181_s12  ;;  %p2186_p1 = scmp.lt.s32.totalorder %s1809_s11, %s1809_s11 }
 0x2a9   :  { %2143 = vmatpush3.bf16.msra.mxu1 %v2142_v50  ;;  %2158 = vmatpush3.bf16.msra.mxu0 %v2157_v51  ;;  %p2187_p2 = scmp.lt.s32.totalorder %s2185_s13, %s2181_s12 }
 0x2aa   :  { %2046 = vmatprep.mubr.msk.f32.mxu1 %vm2206_vm1, %v2205_v2  ;;  %2147 = vmatprep.subr.bf16.mxu1 %v2207_v44 }
 0x2ab   :  { %2081 = vmatprep.mubr.msk.f32.mxu0 %vm2206_vm1, %v2205_v2  ;;  %p2188_p3 = por %p2187_p2, %p2186_p1 }
 0x2ac   :  { %2047 = vmatmul.mubr.msk.f32.vlgmr.msra.gmra.mrb[16].mxu1 %vm345_vm11, %v1254_v58  ;;  %2082 = vmatmul.mubr.msk.f32.vlgmr.msra.gmra.mrb[30].mxu0 %vm345_vm11, %v338_v41 }
 0x2ad   :  { %2149 = vmatpush3.bf16.msra.mxu1 %v2148_v57  ;;  %2060 = vmatprep.mubr.msk.f32.mxu1 %vm2206_vm1, %v2205_v2  ;;  %p2189_p4 = pnand %p2188_p3, %p2182_p0 }
 0x2ae   :  { %2153 = vmatprep.subr.bf16.mxu1 %v2207_v44 }
 0x2b0   :  { %2061 = vmatmul.mubr.msk.f32.vlgmr.msra.gmra.mrb[18].mxu1 %vm345_vm11, %v1399_v61 }
 0x2b1   :  { %2155 = vmatpush3.bf16.msra.mxu1 %v2154_v56  ;;  %2074 = vmatprep.mubr.msk.f32.mxu1 %vm2206_vm1, %v2205_v2 }
 0x2b2   :  { %2159 = vmatprep.subr.bf16.mxu1 %v2207_v44 }
 0x2b4   :  { %2075 = vmatmul.mubr.msk.f32.vlgmr.msra.gmra.mrb[20].mxu1 %vm345_vm11, %v1545_v62 }
 0x2b5   :  { %2102 = vmatprep.mubr.msk.f32.mxu1 %vm2206_vm1, %v2205_v2  ;;  %2161 = vmatpush3.bf16.msra.mxu1 %v2160_v1 }
 0x2b6   :  { %2162 = vmatprep.subr.bf16.mxu1 %v2207_v44 }
 0x2b9   :  { %2164 = vmatpush3.bf16.msra.mxu1 %v2163_v5 }
 0x2ba   :  { %2165 = vmatprep.subr.bf16.mxu1 %v2207_v44 }
 0x2bd   :  { %2167 = vmatpush3.bf16.msra.mxu1 %v2166_v8 }
 0x2be   :  { %2168 = vmatprep.subr.bf16.mxu1 %v2207_v44 }
 0x2c1   :  { %2170 = vmatpush3.bf16.msra.mxu1 %v2169_v11 }
 0x2c2   :  { %2100 = vmatprep.subr.mxu1 %v2205_v2 }
 0x2c5   :  { %2101 = vmatpush3.msra.mxu1 %v1711_v12 }
 0x363   :  { %v414_v13 = vpop.f32.mrb[2].mxu1  ;;  %v645_v14 = vpop.f32.mrb[16].mxu0 }
 0x364   :  { %v1964_v15 = vpop.f32.mrb[3].mxu1  ;;  %v1985_v16 = vpop.f32.mrb[17].mxu0 }
 0x367   :  { %v491_v17 = vpop.f32.mrb[4].mxu1  ;;  %v800_v18 = vpop.f32.mrb[18].mxu0 }
 0x368   :  { %v1971_v19 = vpop.f32.mrb[5].mxu1  ;;  %v1999_v20 = vpop.f32.mrb[19].mxu0 }
 0x36b   :  { %v568_v21 = vpop.f32.mrb[6].mxu1  ;;  %v954_v22 = vpop.f32.mrb[20].mxu0 }
 0x36c   :  { %v1978_v44 = vpop.f32.mrb[7].mxu1  ;;  %v2013_v23 = vpop.f32.mrb[21].mxu0 }
 0x36f   :  { %v723_v24 = vpop.f32.mrb[8].mxu1  ;;  %v1104_v25 = vpop.f32.mrb[22].mxu0 }
 0x370   :  { %v1105_v2 = vadd.f32 %v1104_v25, %v414_v13  ;;  %v1992_v26 = vpop.f32.mrb[9].mxu1  ;;  %v2027_v27 = vpop.f32.mrb[23].mxu0 }
 0x373   :  { %v877_v28 = vpop.f32.mrb[10].mxu1  ;;  %v1250_v29 = vpop.f32.mrb[24].mxu0 }
 0x374   :  { %v1251_v30 = vadd.f32 %v1250_v29, %v568_v21  ;;  %v2006_v31 = vpop.f32.mrb[11].mxu1  ;;  %v2041_v32 = vpop.f32.mrb[25].mxu0 }
 0x377   :  { %v1032_v33 = vpop.f32.mrb[12].mxu1  ;;  %v1395_v34 = vpop.f32.mrb[26].mxu0 }
 0x378   :  { %v1396_v35 = vadd.f32 %v1395_v34, %v723_v24  ;;  %v2020_v36 = vpop.f32.mrb[13].mxu1  ;;  %v2055_v37 = vpop.f32.mrb[27].mxu0 }
 0x37b   :  { %v1177_v38 = vpop.f32.mrb[14].mxu1  ;;  %v1541_v39 = vpop.f32.mrb[28].mxu0 }
 0x37c   :  { %v1178_v40 = vadd.f32 %v1177_v38, %v491_v17  ;;  %v1542_v41 = vadd.f32 %v1541_v39, %v877_v28  ;;  %v2034_v42 = vpop.f32.mrb[15].mxu1  ;;  %v2069_v43 = vpop.f32.mrb[29].mxu0 }
 0x37e   :  { %v1690_v45 = vadd.f32 %v1178_v40, %v1105_v2 }
 0x37f   :  { %v1323_v46 = vpop.f32.mrb[16].mxu1  ;;  %v1686_v47 = vpop.f32.mrb[30].mxu0 }
 0x380   :  { %v1324_v48 = vadd.f32 %v1323_v46, %v645_v14  ;;  %v1687_v49 = vadd.f32 %v1686_v47, %v1032_v33  ;;  %v2048_v50 = vpop.f32.mrb[17].mxu1  ;;  %v2083_v51 = vpop.f32.mrb[31].mxu0 }
 0x382   :  { %v1691_v52 = vadd.f32 %v1324_v48, %v1251_v30 }
 0x383   :  { %v1468_v53 = vpop.f32.mrb[18].mxu1 }
 0x384   :  { %v1694_v54 = vadd.f32 %v1691_v52, %v1690_v45  ;;  %v1469_v55 = vadd.f32 %v1468_v53, %v800_v18  ;;  %v2062_v57 = vpop.f32.mrb[19].mxu1 }
 0x386   :  { %v1692_v58 = vadd.f32 %v1469_v55, %v1396_v35 }
 0x387   :  { %v1614_v59 = vpop.f32.mrb[20].mxu1 }
 0x388   :  { %v1615_v60 = vadd.f32 %v1614_v59, %v954_v22  ;;  %v2076_v56 = vpop.f32.mrb[21].mxu1 }
 0x38a   :  { %v1693_v61 = vadd.f32 %v1615_v60, %v1542_v41 }
 0x38c   :  { %v1695_v62 = vadd.f32 %v1693_v61, %v1692_v58 }
 0x38e   :  { %v1696_v63 = vadd.f32 %v1695_v62, %v1694_v54 }
 0x390   :  { %v1697_v1 = vadd.f32 %v1696_v63, %v1687_v49 }
 0x392   :  { %v1699_v3 = vadd.f32 %v1698_v0, %v1697_v1 }
 0x394   :  { %vm1700_vm14 = vcmp.gt.f32.partialorder %v1699_v3, 0.0  ;;  %v1701_v4 = vmul.f32 0.01, %v1699_v3 }
 0x396   :  { %v1702_v5 = vsel %vm1700_vm14, %v1699_v3, %v1701_v4 }
 0x397   :  { %2103 = vmatmul.mubr.msk.f32.vlgmr.msra.gmra.mrb[22].mxu1 %vm1713_vm15, %v1702_v5 }
 0x46a   :  { %v1783_v7 = vpop.f32.mrb[22].mxu1 }
 0x46b   :  { %v1784_v8 = vadd.f32 %v1783_v7, %v1712_v6  ;;  %v2104_v9 = vpop.f32.mrb[23].mxu1 }
 0x46d   :  { %v1788_v10 = vsel %vm1787_vm0, %v1784_v8, -inf }
 0x46e   :  { %1789 = vmax.xlane.f32.xlu0 %v1788_v10 }
 0x4fb   :  { %v1790_v11 = vpop.xlane.xlu0 %1789 }
 0x4fc   :  { %v1791_v12 = vsub.f32 %v1784_v8, %v1790_v11 }
 0x4fe   :  { %v1792_v13 = vmul.f32 1.442695, %v1791_v12 }
 0x500   :  { %2177 = vpow2.f32 %v1792_v13 }
 0x50a   :  { %v2178_v14 = vpop.eup %2177 }
 0x50b   :  { %v1794_v15 = vsel %vm1787_vm0, %v2178_v14, 0.0 }
 0x50c   :  { %1795 = vadd.xlane.f32.xlu0 %v1794_v15 }
 0x599   :  { %v1796_v16 = vpop.xlane.xlu0 %1795 }
 0x59a   :  { %2179 = vlog2.f32 %v1796_v16 }
 0x5a4   :  { %v2180_v17 = vpop.eup %2179 }
 0x5a5   :  { %v1798_v18 = vmul.f32 0.6931472, %v2180_v17 }
 0x5a7   :  { %v1799_v19 = vadd.f32 %v1798_v18, %v1790_v11 }
 0x5a9   :  { %v1800_v20 = vsub.f32 %v1784_v8, %v1799_v19 }
 0x5ab   :  { %1801 = vst.msk [vmem:[#allocation2] sm:$0x1] %vm1787_vm0, %v1800_v20 }
 0x5ac   :  { %2192 = shalt.err (!%p2189_p4)
}
 0x5ad   :  { %s2193_s16 = scalar_lea.hbm %s2548_s3, 16 }
 0x5ae   :  { %p2194_p5 = scmp.ne.s32.totalorder %s2548_s3, %s2193_s16  ;;  %p2197_p6 = scmp.lt.u32.totalorder %s2193_s16, %s2548_s3 }
 0x5b0   :  { %p2199_p7 = pnand %p2197_p6, %p2194_p5 }
 0x5b2   :  { %2202 = shalt.err (!%p2199_p7)
}
 0x5b3   :  { %1811 = dma.vmem_to_hbm [thread:$0]  %s1809_s11, 16, %s2548_s3, [#allocation3]  }
 0x5b4   :  { %2203 = dma.done.wait [#allocation3], 16  }
 0x5b5   :  { %2204 = vsyncadd [#allocation3], 4294967280 }
 0x5b6   :  { %1815 = vsyncpa [#allocation3], 1 }

</bundles_post_ra>
